<compile_context>
chip_gen: v5e
topology: v5e:2x2
jax: 0.10.0
libtpu: 0.0.40
codegen_flags: <defaults>
</compile_context>

<pallas_src>
import functools
import math

import jax
import jax.numpy as jnp
import numpy as np
from jax.experimental import pallas as pl
from jax.experimental.pallas import tpu as pltpu


def _round_up(x, m):
    return ((x + m - 1) // m) * m


def condition_block_kernel(x_ref, cond_ref, w_in_ref, w_out_ref, b_out_ref,
                           o_ref, *, matmul_dtype):
    x = x_ref[0]                                         # (TM, Cp), io dtype
    # Input path: MXU matmul with pre-transposed/packed weights, f32 accumulation.
    x_in = jnp.dot(x.astype(matmul_dtype), w_in_ref[...],
                   preferred_element_type=jnp.float32)
    # Condition path (incl. b_in + b_cond) precomputed in the wrapper: one broadcast add.
    mix = x_in + cond_ref[0]                             # (TM, Cp) + (1, Cp), f32
    gated = jnp.tanh(mix) * jax.nn.sigmoid(mix)          # EUP, f32
    # Output path + residual.
    y = jnp.dot(gated.astype(matmul_dtype), w_out_ref[...],
                preferred_element_type=jnp.float32)
    y = y + b_out_ref[...] + x.astype(jnp.float32)
    # LeakyReLU(0.2) as a single max (valid since slope < 1).
    o_ref[0] = jnp.maximum(y, 0.2 * y).astype(o_ref.dtype)


def _channel_packing(C):
    """Lane-dense channel layout: returns (P, Cp, c_pad).

    Either P consecutive timesteps are packed into one row of width Cp = P*C
    (block-diagonal weights), or - when that would blow up the packed weight -
    channels are zero-padded to the next multiple of 128 (P = 1)."""
    if C % 128 == 0:
        return 1, C, 0
    P = 128 // math.gcd(C, 128)
    if P * C <= 1024:
        return P, P * C, 0
    Cp = _round_up(C, 128)
    return 1, Cp, Cp - C


def _vmem_budget():
    """(tile-sizing budget, vmem_limit_bytes), tuned per TPU generation."""
    try:
        phys = int(pltpu.get_tpu_info().vmem_capacity_bytes)
    except Exception:
        phys = 64 * 1024 * 1024                          # conservative (v7x-class)
    if phys >= 128 * 1024 * 1024:                        # v5e / v6e
        return 96 * 1024 * 1024, 110 * 1024 * 1024
    return 20 * 1024 * 1024, 32 * 1024 * 1024            # v7x: temp/spill headroom


def condition_block(x, timbre_emb, params, *, matmul_dtype=jnp.float32,
                    io_dtype=None, max_tile_rows=2048):
    """x: (B, T, C) channels-last; timbre_emb: (B, 1, C).

    Returns (B, T, C) in `io_dtype` (defaults to x.dtype, or bf16 when
    matmul_dtype is bf16 to halve HBM traffic)."""
    B, T, C = x.shape
    assert timbre_emb.shape == (B, 1, C), \
        "ConditionBlock kernel expects timbre_emb of shape (B, 1, C)"
    # TODO(synk): per-timestep condition (timbre_emb shaped (B, T, C)) would tile like x.

    if io_dtype is None:
        io_dtype = (jnp.bfloat16
                    if jnp.dtype(matmul_dtype) == jnp.dtype(jnp.bfloat16)
                    else x.dtype)
    io_dtype = jnp.dtype(io_dtype)
    w_bytes = jnp.dtype(matmul_dtype).itemsize
    io_bytes = io_dtype.itemsize

    w_in, b_in, w_cond, b_cond, w_out, b_out = params
    f32 = lambda a: jnp.asarray(a, jnp.float32)

    # ---- wrapper-side layout plumbing: lane-dense packing + weight pre-transpose ----
    P, Cp, c_pad = _channel_packing(C)

    if P > 1:
        eye = jnp.eye(P, dtype=jnp.float32)
        pack_w = lambda w: jnp.kron(eye, f32(w).T)                       # (Cp, Cp)
        pack_row = lambda v: jnp.tile(f32(v).reshape(1, C), (1, P))      # (1, Cp)
        pack_bt = lambda v: jnp.tile(v, (1, 1, P))                       # (B, 1, Cp)
    elif c_pad > 0:
        pack_w = lambda w: jnp.pad(f32(w).T, ((0, c_pad), (0, c_pad)))
        pack_row = lambda v: jnp.pad(f32(v).reshape(1, C), ((0, 0), (0, c_pad)))
        pack_bt = lambda v: jnp.pad(v, ((0, 0), (0, 0), (0, c_pad)))
    else:
        pack_w = lambda w: f32(w).T
        pack_row = lambda v: f32(v).reshape(1, C)
        pack_bt = lambda v: v

    w_in_p = pack_w(w_in).astype(matmul_dtype)
    w_out_p = pack_w(w_out).astype(matmul_dtype)
    b_out_p = pack_row(b_out)                                            # (1, Cp), f32

    # Hoisted condition path: tiny (B,1,C) matmul, both input-side biases folded in.
    cond = (jnp.einsum("bec,oc->beo", f32(timbre_emb), f32(w_cond))
            + f32(b_cond).reshape(1, 1, C) + f32(b_in).reshape(1, 1, C))
    cond_p = pack_bt(cond)                                               # (B, 1, Cp), f32

    # ---- tile sizing against a generation-aware VMEM budget ----
    Tp_raw = -(-T // P)                                  # packed rows before padding
    budget, vmem_limit = _vmem_budget()
    # Double-buffered resident operands: 2 weights, b_out, per-batch cond row.
    resident = 2 * (2 * Cp * Cp * w_bytes + Cp * 4) + 2 * Cp * 4
    # Per packed row: double-buffered x + y tiles plus ~6 f32 elementwise temporaries.
    per_row = 4 * Cp * io_bytes + 6 * Cp * 4
    rows_by_vmem = max(8, (budget - resident) // per_row)

    TM = int(min(max_tile_rows, rows_by_vmem, _round_up(Tp_raw, 8)))
    TM = max(8, (TM // 8) * 8)
    # Give both v7x TensorCores grid steps when the batch axis alone can't provide them.
    if B % 2 == 1 and Tp_raw > 8 and TM >= Tp_raw:
        TM = max(8, _round_up(-(-Tp_raw // 2), 8))

    Tp = _round_up(Tp_raw, TM)
    T_pad = Tp * P
    grid = (B, Tp // TM)

    # ---- pack / pad activations ----
    x_c = x
    if c_pad > 0:
        x_c = jnp.pad(x_c, ((0, 0), (0, 0), (0, c_pad)))
    if T_pad > T:
        x_c = jnp.pad(x_c, ((0, 0), (0, T_pad - T), (0, 0)))
    x_p = x_c.reshape(B, Tp, Cp).astype(io_dtype)

    # ---- cost estimate for the XLA scheduler ----
    flops = 4 * B * Tp * Cp * Cp + 8 * B * Tp * Cp
    transcendentals = 2 * B * Tp * Cp
    bytes_accessed = (2 * B * Tp * Cp * io_bytes        # x in + y out
                      + B * Cp * 4                      # hoisted condition rows
                      + 2 * Cp * Cp * w_bytes           # packed weights
                      + Cp * 4)                         # output bias
    cost = pl.CostEstimate(flops=flops, transcendentals=transcendentals,
                           bytes_accessed=bytes_accessed)

    kernel = functools.partial(condition_block_kernel, matmul_dtype=matmul_dtype)
    const2d = lambda shape: pl.BlockSpec(shape, lambda b, t: (0, 0))

    y_p = pl.pallas_call(
        kernel,
        out_shape=jax.ShapeDtypeStruct((B, Tp, Cp), io_dtype),
        grid_spec=pltpu.PrefetchScalarGridSpec(
            num_scalar_prefetch=0,
            grid=grid,
            in_specs=[
                pl.BlockSpec((1, TM, Cp), lambda b, t: (b, t, 0)),   # x (packed/padded)
                pl.BlockSpec((1, 1, Cp), lambda b, t: (b, 0, 0)),    # hoisted condition
                const2d((Cp, Cp)),                                   # W_in^T (packed)
                const2d((Cp, Cp)),                                   # W_out^T (packed)
                const2d((1, Cp)),                                    # b_out (packed)
            ],
            out_specs=pl.BlockSpec((1, TM, Cp), lambda b, t: (b, t, 0)),
        ),
        compiler_params=pltpu.CompilerParams(
            dimension_semantics=("parallel", "parallel"),
            vmem_limit_bytes=vmem_limit,
        ),
        cost_estimate=cost,
    )(x_p, cond_p, w_in_p, w_out_p, b_out_p)

    if c_pad > 0:
        return y_p[:, :T, :C]
    return y_p.reshape(B, T_pad, C)[:, :T, :]


def reference(x, timbre_emb, params):
    w_in, b_in, w_cond, b_cond, w_out, b_out = params
    C = x.shape[-1]
    r = lambda b: jnp.asarray(b, jnp.float32).reshape(1, 1, C)
    x_in = jnp.einsum("btc,oc->bto", x, w_in) + r(b_in)
    cond = jnp.einsum("btc,oc->bto", timbre_emb, w_cond) + r(b_cond)
    mix = x_in + cond
    gated = jnp.tanh(mix) * jax.nn.sigmoid(mix)
    y = jnp.einsum("btc,oc->bto", gated, w_out) + r(b_out) + x
    return jnp.where(y > 0, y, 0.2 * y)


if __name__ == "__main__":
    key = jax.random.PRNGKey(0)

    def make_case(k, B, T, C):
        keys = jax.random.split(k, 8)
        scale = 1.0 / np.sqrt(C)
        x = jax.random.normal(keys[0], (B, T, C), dtype=jnp.float32)
        e = jax.random.normal(keys[1], (B, 1, C), dtype=jnp.float32)
        u = lambda kk, s: jax.random.uniform(kk, s, jnp.float32, -scale, scale)
        params = (u(keys[2], (C, C)), u(keys[3], (1, C)),
                  u(keys[4], (C, C)), u(keys[5], (1, C)),
                  u(keys[6], (C, C)), u(keys[7], (1, C)))
        return x, e, params

    k0, k1, k2 = jax.random.split(key, 3)

    # Case 1: B=2, T=64, C=32 -> kron packing (P=4, Cp=128), single time tile per batch.
    x, e, params = make_case(k0, 2, 64, 32)
    ref = reference(x, e, params)
    out = jax.block_until_ready(condition_block(x, e, params))
    np.testing.assert_allclose(np.asarray(out), np.asarray(ref), rtol=1e-5, atol=1e-5)

    # Same case, forced into multiple time tiles (grid = (2, 2)).
    out_tiled = jax.block_until_ready(condition_block(x, e, params, max_tile_rows=8))
    np.testing.assert_allclose(np.asarray(out_tiled), np.asarray(ref),
                               rtol=1e-5, atol=1e-5)

    # bf16 matmul + bf16 activation I/O (HBM-traffic halving path); loose tolerance.
    out_bf16 = jax.block_until_ready(
        condition_block(x, e, params, matmul_dtype=jnp.bfloat16))
    np.testing.assert_allclose(np.asarray(out_bf16.astype(jnp.float32)),
                               np.asarray(ref), rtol=1e-1, atol=1e-1)

    # Case 2: odd batch + T not divisible by the pack factor -> time padding + 2 row tiles.
    x2, e2, params2 = make_case(k1, 1, 50, 32)
    ref2 = reference(x2, e2, params2)
    out2 = jax.block_until_ready(condition_block(x2, e2, params2))
    np.testing.assert_allclose(np.asarray(out2), np.asarray(ref2), rtol=1e-5, atol=1e-5)

    # Case 3: channels where kron packing is impractical -> zero-pad C to 128 lanes.
    x3, e3, params3 = make_case(k2, 2, 16, 72)
    ref3 = reference(x3, e3, params3)
    out3 = jax.block_until_ready(condition_block(x3, e3, params3))
    np.testing.assert_allclose(np.asarray(out3), np.asarray(ref3), rtol=1e-5, atol=1e-5)

    print("KERNEL_OK")
</pallas_src>

<mosaic_0001>
module attributes {stable_mosaic.version = 11 : i64} {
  func.func @condition_block_kernel(%arg0: i32, %arg1: i32, %arg2: memref<1x16x128xf32, #tpu.memory_space<vmem>>, %arg3: memref<1x1x128xf32, #tpu.memory_space<vmem>>, %arg4: memref<128x128xf32, #tpu.memory_space<vmem>>, %arg5: memref<128x128xf32, #tpu.memory_space<vmem>>, %arg6: memref<1x128xf32, #tpu.memory_space<vmem>>, %arg7: memref<1x16x128xf32, #tpu.memory_space<vmem>>) attributes {dimension_semantics = [#tpu.dimension_semantics<parallel>, #tpu.dimension_semantics<parallel>], iteration_bounds = array<i64: 2, 1>, scalar_prefetch = 0 : i64, scratch_operands = 0 : i64, tpu.core_type = #tpu.core_type<tc>, window_params = [{transform_indices = @transform_0, window_bounds = array<i64: 1, 16, 128>}, {transform_indices = @transform_1, window_bounds = array<i64: 1, 1, 128>}, {pipeline_mode = #tpu.pipeline_mode<synchronous>, transform_indices = @transform_2, window_bounds = array<i64: 128, 128>}, {pipeline_mode = #tpu.pipeline_mode<synchronous>, transform_indices = @transform_3, window_bounds = array<i64: 128, 128>}, {pipeline_mode = #tpu.pipeline_mode<synchronous>, transform_indices = @transform_4, window_bounds = array<i64: 1, 128>}, {transform_indices = @transform_5, window_bounds = array<i64: 1, 16, 128>}]} {
    %c0 = arith.constant 0 : index
    %c0_0 = arith.constant 0 : index
    %c0_1 = arith.constant 0 : index
    %0 = vector.load %arg2[%c0, %c0_0, %c0_1] : memref<1x16x128xf32, #tpu.memory_space<vmem>>, vector<1x16x128xf32>
    %1 = vector.shape_cast %0 : vector<1x16x128xf32> to vector<16x128xf32>
    %c0_2 = arith.constant 0 : index
    %c0_3 = arith.constant 0 : index
    %2 = vector.load %arg4[%c0_2, %c0_3] : memref<128x128xf32, #tpu.memory_space<vmem>>, vector<128x128xf32>
    %cst = arith.constant dense<0.000000e+00> : vector<16x128xf32>
    %3 = tpu.matmul %1, %2, %cst {dimension_numbers = #tpu.dot_dimension_numbers<[1], [0], [0], [1], [0, 0, 1, 1], [], []>} : vector<16x128xf32>, vector<128x128xf32>, vector<16x128xf32> -> vector<16x128xf32>
    %c0_4 = arith.constant 0 : index
    %c0_5 = arith.constant 0 : index
    %c0_6 = arith.constant 0 : index
    %4 = vector.load %arg3[%c0_4, %c0_5, %c0_6] : memref<1x1x128xf32, #tpu.memory_space<vmem>>, vector<1x1x128xf32>
    %5 = vector.shape_cast %4 : vector<1x1x128xf32> to vector<1x128xf32>
    %6 = vector.broadcast %5 : vector<1x128xf32> to vector<16x128xf32>
    %7 = arith.addf %3, %6 : vector<16x128xf32>
    %8 = math.tanh %7 : vector<16x128xf32>
    %9 = arith.negf %7 : vector<16x128xf32>
    %10 = math.exp %9 : vector<16x128xf32>
    %cst_7 = arith.constant 1.000000e+00 : f32
    %11 = vector.broadcast %cst_7 : f32 to vector<16x128xf32>
    %12 = arith.addf %11, %10 : vector<16x128xf32>
    %13 = arith.divf %11, %12 : vector<16x128xf32>
    %14 = arith.mulf %8, %13 : vector<16x128xf32>
    %c0_8 = arith.constant 0 : index
    %c0_9 = arith.constant 0 : index
    %15 = vector.load %arg5[%c0_8, %c0_9] : memref<128x128xf32, #tpu.memory_space<vmem>>, vector<128x128xf32>
    %cst_10 = arith.constant dense<0.000000e+00> : vector<16x128xf32>
    %16 = tpu.matmul %14, %15, %cst_10 {dimension_numbers = #tpu.dot_dimension_numbers<[1], [0], [0], [1], [0, 0, 1, 1], [], []>} : vector<16x128xf32>, vector<128x128xf32>, vector<16x128xf32> -> vector<16x128xf32>
    %c0_11 = arith.constant 0 : index
    %c0_12 = arith.constant 0 : index
    %17 = vector.load %arg6[%c0_11, %c0_12] : memref<1x128xf32, #tpu.memory_space<vmem>>, vector<1x128xf32>
    %18 = vector.broadcast %17 : vector<1x128xf32> to vector<16x128xf32>
    %19 = arith.addf %16, %18 : vector<16x128xf32>
    %20 = arith.addf %19, %1 : vector<16x128xf32>
    %cst_13 = arith.constant 2.000000e-01 : f32
    %21 = vector.broadcast %cst_13 : f32 to vector<16x128xf32>
    %22 = arith.mulf %21, %20 : vector<16x128xf32>
    %23 = arith.maximumf %20, %22 : vector<16x128xf32>
    %c0_14 = arith.constant 0 : index
    %c0_15 = arith.constant 0 : index
    %c0_16 = arith.constant 0 : index
    %24 = vector.load %arg7[%c0_14, %c0_15, %c0_16] : memref<1x16x128xf32, #tpu.memory_space<vmem>>, vector<1x16x128xf32>
    %25 = vector.shape_cast %24 : vector<1x16x128xf32> to vector<16x128xf32>
    %26 = vector.shape_cast %23 : vector<16x128xf32> to vector<1x16x128xf32>
    tpu.vector_store %arg7[%c0_14, %c0_15, %c0_16], %26 {strides = array<i32>} : memref<1x16x128xf32, #tpu.memory_space<vmem>>, vector<1x16x128xf32>,
    return
  }
  func.func @transform_0(%arg0: i32, %arg1: i32) -> (i32, i32, i32) {
    %c0_i32 = arith.constant 0 : i32
    %c0_i32_0 = arith.constant 0 : i32
    return %arg0, %arg1, %c0_i32 : i32, i32, i32
  }
  func.func @transform_1(%arg0: i32, %arg1: i32) -> (i32, i32, i32) {
    %c0_i32 = arith.constant 0 : i32
    %c0_i32_0 = arith.constant 0 : i32
    %c0_i32_1 = arith.constant 0 : i32
    return %arg0, %c0_i32, %c0_i32_0 : i32, i32, i32
  }
  func.func @transform_2(%arg0: i32, %arg1: i32) -> (i32, i32) {
    %c0_i32 = arith.constant 0 : i32
    %c0_i32_0 = arith.constant 0 : i32
    %c0_i32_1 = arith.constant 0 : i32
    return %c0_i32, %c0_i32_0 : i32, i32
  }
  func.func @transform_3(%arg0: i32, %arg1: i32) -> (i32, i32) {
    %c0_i32 = arith.constant 0 : i32
    %c0_i32_0 = arith.constant 0 : i32
    %c0_i32_1 = arith.constant 0 : i32
    return %c0_i32, %c0_i32_0 : i32, i32
  }
  func.func @transform_4(%arg0: i32, %arg1: i32) -> (i32, i32) {
    %c0_i32 = arith.constant 0 : i32
    %c0_i32_0 = arith.constant 0 : i32
    %c0_i32_1 = arith.constant 0 : i32
    return %c0_i32, %c0_i32_0 : i32, i32
  }
  func.func @transform_5(%arg0: i32, %arg1: i32) -> (i32, i32, i32) {
    %c0_i32 = arith.constant 0 : i32
    %c0_i32_0 = arith.constant 0 : i32
    return %arg0, %arg1, %c0_i32 : i32, i32, i32
  }
}

</mosaic_0001>

<bundles_post_ra>
// kernel: tpu_custom_call.1
= control target key start
LH: loop header
LB: loop body
LE: loop exit
PB: predicated region body
PF: predicated region fallthrough
CT: control target
= control target key end

     0   :  { %s1222_s0 = inlined_call_operand.hbm [shape: f32[2,16,128], index: 0, kind: input, shape index: {}]   ;;  %s1223_s1 = inlined_call_operand.hbm [shape: f32[2,1,128], index: 1, kind: input, shape index: {}]   ;;  %s1224_s2 = inlined_call_operand.hbm [shape: f32[128,128], index: 2, kind: input, shape index: {}]   ;;  %s1225_s3 = inlined_call_operand.hbm [shape: f32[128,128], index: 3, kind: input, shape index: {}]   ;;  %s1226_s4 = inlined_call_operand.vmem [shape: f32[1,128], index: 4, kind: input, shape index: {}]   ;;  %s1227_s5 = inlined_call_operand.hbm [shape: f32[2,16,128], index: 5, kind: output, shape index: {}]  }
   0x1   :  { %1232 = sst [smem:[#allocation19_spill]] %s1224_s2 }
   0x2   :  { %1233 = sst [smem:[#allocation20_spill]] %s1225_s3 }
   0x3   :  { %10 = vsyncpa [#allocation3], 0 }
   0x4   :  { %12 = vsyncpa [#allocation3 + $0x1], 0 }
   0x5   :  { %13 = vsyncpa [#allocation6], 0 }
   0x6   :  { %15 = vsyncpa [#allocation6 + $0x1], 0 }
   0x7   :  { %16 = vsyncpa [#allocation9], 0 }
   0x8   :  { %17 = vsyncpa [#allocation4], 0 }
   0x9   :  { %19 = vsyncpa [#allocation4 + $0x1], 0  ;;  %s1027_s18 = smov 0   ;;  %s1029_s19 = smov 0  }
   0xa   :  { %s1031_s20 = smov 0   ;;  %s1033_s21 = smov 0  }
   0xb   :  { %s1035_s22 = smov 0   ;;  %s1037_s23 = smov 0  }
   0xc LB: > { %s1058_s24 = sadd.s32 4294967295, %s989_s23   ;;  %s615_s25 = sadd.s32 4294967294, %s989_s23   ;;  %s989_s23 = sphi %s1037_s23, %s25_s23   ;;  %s985_s22 = sphi %s1035_s22, %s1253_s22   ;;  %s981_s21 = sphi %s1033_s21, %s1252_s21   ;;  %s977_s20 = sphi %s1031_s20, %s1251_s20   ;;  %s973_s19 = sphi %s1029_s19, %s1250_s19   ;;  %s969_s18 = sphi %s1027_s18, %s1249_s18  }
   0xd   : > { %p59_p0 = scmp.ne.s32.totalorder %s973_s19, %s969_s18  ;;  %p60_p1 = scmp.eq.s32.totalorder %s1058_s24, 0 }
   0xe   : > { %p174_p2 = scmp.eq.s32.totalorder %s1058_s24, 1  ;;  %p180_p3 = scmp.eq.s32.totalorder %s615_s25, 1 }
   0xf   : > { %p1067_p4 = por %p60_p1, %p59_p0  ;;  %p616_p5 = scmp.ge.s32.totalorder %s989_s23, 1 }
  0x10   : > { %p1072_p6 = por %p180_p3, %p59_p0  ;;  %p187_p7 = scmp.lt.s32.totalorder %s989_s23, 3 }
  0x11   : > { %s1237_s2 = sld [smem:[#allocation19_spill]]  ;;  %s991_s7 = smov [#allocation7]  }
  0x12   : > { %s1235_s27 = scalar_select %p1072_p6, 1, 0 }
  0x13   : > { %p1080_p8 = pnand %p616_p5, %p187_p7  ;;  %s200_s8 = sshll.u32 %s991_s7, 4  ;;  %s201_s8 = int_to_ptr.vmem [resolvable:$true] %s200_s8 }
  0x14   : > { %1236 = sst [smem:[#allocation16_spill]] %s1235_s27  ;;  %p619_p11 = scmp.ge.s32.totalorder %s989_s23, 2 }
  0x15   : > { %p683_p9 = pneg %p1080_p8  ;;  %s1239_s3 = sld [smem:[#allocation20_spill]] }
  0x16   : > { %s1228_s12 = smov 128   ;;  %s1229_s13 = smov 8  }
  0x17   : > { %s198_s30 = sshll.u32 %s1237_s2, 4  ;;  %p684_p10 = pnand %p683_p9, %p60_p1  ;;  %s199_s30 = int_to_ptr.hbm [resolvable:$true] %s198_s30 }
  0x18   : > { %s994_s14 = smov [#allocation8]   ;;  %s37_s16 = sadd.s32 1, %s985_s22 }
  0x19   : > { %686 = dma.hbm_to_vmem [thread:$0]  (!%p684_p10), %s199_s30, 2048, %s201_s8, [#allocation6], %s1228_s12, %s1228_s12, %s1229_s13  }
  0x1a   : > { %s214_s15 = sshll.u32 %s994_s14, 4  ;;  %s46_s17 = sadd.s32 1, %s977_s20  ;;  %s215_s15 = int_to_ptr.vmem [resolvable:$true] %s214_s15 }
  0x1b   : > { %s212_s11 = sshll.u32 %s1239_s3, 4  ;;  %p39_p12 = scmp.ge.s32.totalorder %s37_s16, 2  ;;  %s213_s11 = int_to_ptr.hbm [resolvable:$true] %s212_s11 }
  0x1c   : > { %689 = dma.hbm_to_vmem [thread:$0]  (!%p684_p10), %s213_s11, 2048, %s215_s15, [#allocation9], %s1228_s12, %s1228_s12, %s1229_s13  }
  0x1d   : > { %p53_p13 = scmp.ne.s32.totalorder %s977_s20, %s973_s19  ;;  %p54_p0 = scmp.eq.s32.totalorder %s989_s23, 0 }
  0x1e   : > { %p703_p3 = scmp.lt.s32.totalorder %s989_s23, 2  ;;  %s1255_s16 = smov (%p39_p12, %s37_s16), 0 }
  0x1f   : > { %1240 = sst [smem:[#allocation17_spill]] %s1255_s16  ;;  %p1106_p5 = por %p54_p0, %p53_p13 }
  0x20   : > { %p1112_p7 = por %p174_p2, %p53_p13  ;;  %s41_s29 = ssub.s32 %s985_s22, %s1255_s16 }
  0x21   : > { %s231_s30 = sand.u32 1, %s977_s20   ;;  %p44_p9 = scmp.eq.s32.totalorder %s41_s29, 0 }
  0x22   : > { %s620_s7 = sshll.u32 %s231_s30, 4  ;;  %s635_s8 = sshll.u32 %s985_s22, 4 }
  0x23   : > { %s1121_s9 = scalar_select %p44_p9, %s977_s20, %s46_s17  }
  0x24   : > { %s242_s14 = scalar_lea.hbm %s1222_s0, %s635_s8  ;;  %s235_s12 = scalar_lea.vmem [#allocation2], %s620_s7 }
  0x25   : > { %1243 = sst [smem:[#allocation18_spill]] %s1121_s9  ;;  %s243_s15 = sshll.u32 %s242_s14, 4  ;;  %s244_s15 = int_to_ptr.hbm [resolvable:$true] %s243_s15 }
  0x26   : > { %s245_s13 = sshll.u32 %s235_s12, 4  ;;  %p691_p2 = pnand %p703_p3, %p1106_p5  ;;  %s246_s13 = int_to_ptr.vmem [resolvable:$true] %s245_s13 }
  0x27   : > { %s255_s2 = sand.u32 1, %s989_s23   ;;  %s261_s29 = scalar_lea.hbm %s1223_s1, %s985_s22 }
  0x28   : > { %s232_s27 = scalar_lea.sflag [#allocation3], %s231_s30  ;;  %s1244_s17 = smov 8  }
  0x29   : > { %s1245_s9 = smov 128   ;;  %s263_s10 = sshll.u32 %s261_s29, 4  ;;  %s264_s10 = int_to_ptr.hbm [resolvable:$true] %s263_s10 }
  0x2a   : > { %693 = dma.hbm_to_vmem [thread:$0]  (!%p691_p2), %s244_s15, 256, %s246_s13, %s232_s27, %s1245_s9, %s1245_s9, %s1244_s17  }
  0x2b   : > { %s258_s8 = scalar_lea.vmem [#allocation5], %s231_s30  ;;  %s256_s12 = scalar_lea.sflag [#allocation6], %s255_s2 }
  0x2c   : > { %s265_s11 = sshll.u32 %s258_s8, 4  ;;  %274 = sbr.rel (%p1080_p8) target bundleno = 397 (0x18d), region = 40  ;;  %s266_s11 = int_to_ptr.vmem [resolvable:$true] %s265_s11 }
  0x2d   : > { %696 = dma.hbm_to_vmem [thread:$0]  (!%p691_p2), %s264_s10, 16, %s266_s11, %s256_s12  }
  0x2e   : > { %s1141_s25 = sand.u32 (!%p1080_p8), 1, %s973_s19  }
  0x2f   : > { %s624_s3 = sshll.u32 (!%p1080_p8), %s1141_s25, 4  ;;  %s277_s16 = scalar_lea.sflag (!%p1080_p8), [#allocation3], %s1141_s25 }
  0x30   : > { %s1147_s27 = scalar_lea.vmem (!%p1080_p8), [#allocation2], %s624_s3 }
  0x31   : > { %948 = dma.done.wait (%p1067_p4), %s277_s16, 256  }
  0x32   : > { %950 = vsyncadd (%p1067_p4), %s277_s16, 4294967040  ;;  %s286_s2 = sand.u32 1, %s1058_s24   ;;  %s289_s13 = scalar_lea.vmem [#allocation5], %s1141_s25 }
  0x33   : > { %s287_s6 = scalar_lea.sflag [#allocation6], %s286_s2 }
  0x34   : > { %952 = dma.done.wait (%p1067_p4), %s287_s6, 16  }
  0x35   : > { %954 = vsyncadd (%p1067_p4), %s287_s6, 4294967280 }
  0x36   : > { %956 = dma.done.wait (%p60_p1), [#allocation6], 2048  }
  0x37   : > { %958 = vsyncadd (%p60_p1), [#allocation6], 4294965248 }
  0x38   : > { %960 = dma.done.wait (%p60_p1), [#allocation9], 2048  }
  0x39   : > { %962 = vsyncadd (%p60_p1), [#allocation9], 4294965248  ;;  %v350_v0 = vld [vmem:[#allocation7 + $0x78] sm:$0xff]  ;;  %v349_v1 = vld [vmem:[#allocation7 + $0x70] sm:$0xff]  ;;  %s330_s30 = scalar_lea.vmem [#allocation10], %s624_s3  ;;  %s636_s7 = sshll.u32 %s981_s21, 4 }
  0x3a   : > { %355 = vmatpush.msra.mxu0 %v350_v0  ;;  %637 = vmatpush.msra.mxu2 %v350_v0  ;;  %v348_v2 = vld [vmem:[#allocation7 + $0x68] sm:$0xff]  ;;  %v347_v3 = vld [vmem:[#allocation7 + $0x60] sm:$0xff]  ;;  %v346_v4 = vld [vmem:[#allocation7 + $0x58] sm:$0xff]  ;;  %s485_s15 = scalar_lea.hbm %s1227_s5, %s636_s7  ;;  %s486_s29 = sshll.u32 %s330_s30, 4  ;;  %s487_s29 = int_to_ptr.vmem [resolvable:$true] %s486_s29 }
  0x3b   : > { %v345_v5 = vld [vmem:[#allocation7 + $0x50] sm:$0xff]  ;;  %v344_v6 = vld [vmem:[#allocation7 + $0x48] sm:$0xff]  ;;  %v343_v7 = vld [vmem:[#allocation7 + $0x40] sm:$0xff]  ;;  %s488_s17 = sshll.u32 %s485_s15, 4  ;;  %s472_s10 = scalar_lea.sflag [#allocation4], %s1141_s25  ;;  %s489_s17 = int_to_ptr.hbm [resolvable:$true] %s488_s17 }
  0x3c   : > { %356 = vmatpush.msra.mxu0 %v349_v1  ;;  %638 = vmatpush.msra.mxu2 %v349_v1  ;;  %v342_v8 = vld [vmem:[#allocation7 + $0x38] sm:$0xff]  ;;  %v341_v9 = vld [vmem:[#allocation7 + $0x30] sm:$0xff]  ;;  %v340_v10 = vld [vmem:[#allocation7 + $0x28] sm:$0xff]  ;;  %s909_s8 = sshra.s32 %s489_s17, 4  ;;  %s915_s3 = scalar_lea.hbm %s1227_s5, 32  ;;  %s910_s8 = int_to_ptr.hbm [resolvable:$true] %s909_s8 }
  0x3d   : > { %v339_v11 = vld [vmem:[#allocation7 + $0x20] sm:$0xff]  ;;  %v338_v12 = vld [vmem:[#allocation7 + $0x18] sm:$0xff]  ;;  %v337_v13 = vld [vmem:[#allocation7 + $0x10] sm:$0xff]  ;;  %s911_s21 = scalar_lea.hbm %s910_s8, 16  ;;  %p916_p10 = scmp.lt.s32.totalorder %s910_s8, %s1227_s5 }
  0x3e   : > { %357 = vmatpush.msra.mxu0 %v348_v2  ;;  %639 = vmatpush.msra.mxu2 %v348_v2  ;;  %v336_v14 = vld [vmem:[#allocation7 + $0x8] sm:$0xff]  ;;  %v335_v15 = vld [vmem:[#allocation7] sm:$0xff]  ;;  %v435_v18 = vld [vmem:[#allocation8 + $0x78] sm:$0xff]  ;;  %p912_p1 = scmp.ne.s32.totalorder %s910_s8, %s911_s21  ;;  %p917_p12 = scmp.lt.s32.totalorder %s915_s3, %s911_s21 }
  0x3f   : > { %v1168_v16 = vld [vmem:[%s1147_s27] sm:$0xff]  ;;  %v1171_v17 = vld [vmem:[%s1147_s27 + $0x8] sm:$0xff]  ;;  %440 = vmatpush.msra.mxu1 %v435_v18  ;;  %653 = vmatpush.msra.mxu3 %v435_v18 }
  0x40   : > { %358 = vmatpush.msra.mxu0 %v347_v3  ;;  %640 = vmatpush.msra.mxu2 %v347_v3  ;;  %v434_v19 = vld [vmem:[#allocation8 + $0x70] sm:$0xff]  ;;  %v433_v20 = vld [vmem:[#allocation8 + $0x68] sm:$0xff]  ;;  %v432_v21 = vld [vmem:[#allocation8 + $0x60] sm:$0xff]  ;;  %p913_p4 = pnand %p912_p1, %p1112_p7  ;;  %p918_p13 = por %p917_p12, %p916_p10 }
  0x41   : > { %441 = vmatpush.msra.mxu1 %v434_v19  ;;  %654 = vmatpush.msra.mxu3 %v434_v19  ;;  %v431_v22 = vld [vmem:[#allocation8 + $0x58] sm:$0xff]  ;;  %v430_v23 = vld [vmem:[#allocation8 + $0x50] sm:$0xff]  ;;  %v429_v24 = vld [vmem:[#allocation8 + $0x48] sm:$0xff] }
  0x42   : > { %359 = vmatpush.msra.mxu0 %v346_v4  ;;  %641 = vmatpush.msra.mxu2 %v346_v4  ;;  %v428_v25 = vld [vmem:[#allocation8 + $0x40] sm:$0xff]  ;;  %v427_v26 = vld [vmem:[#allocation8 + $0x38] sm:$0xff]  ;;  %v426_v27 = vld [vmem:[#allocation8 + $0x30] sm:$0xff]  ;;  %p914_p8 = pneg %p913_p4 }
  0x43   : > { %442 = vmatpush.msra.mxu1 %v433_v20  ;;  %655 = vmatpush.msra.mxu3 %v433_v20  ;;  %v425_v28 = vld [vmem:[#allocation8 + $0x28] sm:$0xff]  ;;  %v424_v29 = vld [vmem:[#allocation8 + $0x20] sm:$0xff]  ;;  %v423_v30 = vld [vmem:[#allocation8 + $0x18] sm:$0xff] }
  0x44   : > { %360 = vmatpush.msra.mxu0 %v345_v5  ;;  %642 = vmatpush.msra.mxu2 %v345_v5  ;;  %v422_v31 = vld [vmem:[#allocation8 + $0x10] sm:$0xff]  ;;  %v421_v32 = vld [vmem:[#allocation8 + $0x8] sm:$0xff]  ;;  %v761_v33 = vld [vmem:[%s289_s13] ss:$0 sm:$0xff]  ;;  %p919_p0 = pnand %p918_p13, %p914_p8 }
  0x45   : > { %443 = vmatpush.msra.mxu1 %v432_v21  ;;  %656 = vmatpush.msra.mxu3 %v432_v21  ;;  %v420_v34 = vld [vmem:[#allocation8] sm:$0xff]  ;;  %v762_v5 = vld [vmem:[%s1226_s4] ss:$0 sm:$0xff] }
  0x46   : > { %361 = vmatpush.msra.mxu0 %v344_v6  ;;  %643 = vmatpush.msra.mxu2 %v344_v6 }
  0x47   : > { %444 = vmatpush.msra.mxu1 %v431_v22  ;;  %657 = vmatpush.msra.mxu3 %v431_v22 }
  0x48   : > { %362 = vmatpush.msra.mxu0 %v343_v7  ;;  %644 = vmatpush.msra.mxu2 %v343_v7 }
  0x49   : > { %445 = vmatpush.msra.mxu1 %v430_v23  ;;  %658 = vmatpush.msra.mxu3 %v430_v23 }
  0x4a   : > { %363 = vmatpush.msra.mxu0 %v342_v8  ;;  %645 = vmatpush.msra.mxu2 %v342_v8 }
  0x4b   : > { %446 = vmatpush.msra.mxu1 %v429_v24  ;;  %659 = vmatpush.msra.mxu3 %v429_v24 }
  0x4c   : > { %364 = vmatpush.msra.mxu0 %v341_v9  ;;  %646 = vmatpush.msra.mxu2 %v341_v9 }
  0x4d   : > { %447 = vmatpush.msra.mxu1 %v428_v25  ;;  %660 = vmatpush.msra.mxu3 %v428_v25 }
  0x4e   : > { %365 = vmatpush.msra.mxu0 %v340_v10  ;;  %647 = vmatpush.msra.mxu2 %v340_v10 }
  0x4f   : > { %448 = vmatpush.msra.mxu1 %v427_v26  ;;  %661 = vmatpush.msra.mxu3 %v427_v26 }
  0x50   : > { %366 = vmatpush.msra.mxu0 %v339_v11  ;;  %648 = vmatpush.msra.mxu2 %v339_v11 }
  0x51   : > { %449 = vmatpush.msra.mxu1 %v426_v27  ;;  %662 = vmatpush.msra.mxu3 %v426_v27 }
  0x52   : > { %367 = vmatpush.msra.mxu0 %v338_v12  ;;  %649 = vmatpush.msra.mxu2 %v338_v12 }
  0x53   : > { %450 = vmatpush.msra.mxu1 %v425_v28  ;;  %663 = vmatpush.msra.mxu3 %v425_v28 }
  0x54   : > { %368 = vmatpush.msra.mxu0 %v337_v13  ;;  %650 = vmatpush.msra.mxu2 %v337_v13 }
  0x55   : > { %451 = vmatpush.msra.mxu1 %v424_v29  ;;  %664 = vmatpush.msra.mxu3 %v424_v29 }
  0x56   : > { %369 = vmatpush.msra.mxu0 %v336_v14  ;;  %651 = vmatpush.msra.mxu2 %v336_v14 }
  0x57   : > { %452 = vmatpush.msra.mxu1 %v423_v30  ;;  %665 = vmatpush.msra.mxu3 %v423_v30 }
  0x58   : > { %370 = vmatpush.msra.mxu0 %v335_v15  ;;  %652 = vmatpush.msra.mxu2 %v335_v15 }
  0x59   : > { %371 = vmatmul.f32.vlgmr.msra.gmra.mxu0 %v1168_v16  ;;  %374 = vmatmul.f32.vlgmr.msra.gmra.mxu2 %v1171_v17 }
  0x5a   : > { %453 = vmatpush.msra.mxu1 %v422_v31  ;;  %666 = vmatpush.msra.mxu3 %v422_v31 }
  0x5c   : > { %454 = vmatpush.msra.mxu1 %v421_v32  ;;  %667 = vmatpush.msra.mxu3 %v421_v32 }
  0x5e   : > { %455 = vmatpush.msra.mxu1 %v420_v34  ;;  %668 = vmatpush.msra.mxu3 %v420_v34 }
  0xd6   : > { %v372_v35 = vpop.f32.mrf.mxu0 }
  0xd7   : > { %v373_v36 = vadd.f32 %v761_v33, %v372_v35 }
  0xd9   : > { %v628_v37 = vmul.f32 -1.442695, %v373_v36 }
  0xdb   : > { %763 = vpow2.f32 %v628_v37 }
  0xdc   : > { %v375_v38 = vpop.f32.mrf.mxu2 }
  0xdd   : > { %v376_v39 = vadd.f32 %v761_v33, %v375_v38 }
  0xdf   : > { %v629_v40 = vmul.f32 -1.442695, %v376_v39 }
  0xe1   : > { %v764_v41 = vpop.eup %763  ;;  %765 = vpow2.f32 %v629_v40 }
  0xe2   : > { %v386_v42 = vadd.f32 1.0, %v764_v41 }
  0xe4   : > { %767 = vrcp.f32 %v386_v42  ;;  %v399_v47 = vand.u32 2147483648, %v386_v42  ;;  %vm393_vm0 = vweird.f32 %v386_v42  ;;  %v397_v49 = vand.u32 2147483647, %v386_v42 }
  0xe6   : > { %v400_v52 = vor.u32 1.1754944e-38, %v399_v47  ;;  %vm398_vm3 = vcmp.eq.f32.partialorder %v397_v49, 8.507059e+37 }
  0xe7   : > { %v766_v43 = vpop.eup %765 }
  0xe8   : > { %v387_v44 = vadd.f32 1.0, %v766_v43 }
  0xea   : > { %v768_v45 = vpop.eup %767  ;;  %769 = vrcp.f32 %v387_v44  ;;  %v414_v59 = vand.u32 2147483648, %v387_v44  ;;  %v412_v62 = vand.u32 2147483647, %v387_v44  ;;  %vm408_vm5 = vweird.f32 %v387_v44 }
  0xeb   : > { %v389_v46 = vmul.f32 %v768_v45, %v386_v42  ;;  %vm394_vm1 = vweird.f32 %v768_v45  ;;  %771 = vtanh.f32 %v373_v36 }
  0xec   : > { %vm395_vm2 = vmor %vm393_vm0, %vm394_vm1  ;;  %773 = vtanh.f32 %v376_v39  ;;  %v415_v0 = vor.u32 1.1754944e-38, %v414_v59  ;;  %vm413_vm7 = vcmp.eq.f32.partialorder %v412_v62, 8.507059e+37 }
  0xed   : > { %v390_v48 = vsub.f32 1.0, %v389_v46 }
  0xef   : > { %v391_v50 = vmul.f32 %v768_v45, %v390_v48 }
  0xf0   : > { %v770_v51 = vpop.eup %769 }
  0xf1   : > { %v392_v53 = vadd.f32 %v768_v45, %v391_v50  ;;  %v404_v54 = vmul.f32 %v770_v51, %v387_v44  ;;  %v772_v57 = vpop.eup %771  ;;  %vm409_vm4 = vweird.f32 %v770_v51 }
  0xf2   : > { %vm410_vm6 = vmor %vm408_vm5, %vm409_vm4  ;;  %v774_v2 = vpop.eup %773 }
  0xf3   : > { %v396_v55 = vsel %vm395_vm2, %v768_v45, %v392_v53  ;;  %v405_v56 = vsub.f32 1.0, %v404_v54 }
  0xf4   : > { %v401_v58 = vsel %vm398_vm3, %v400_v52, %v396_v55 }
  0xf5   : > { %v418_v60 = vmul.f32 %v772_v57, %v401_v58  ;;  %v406_v61 = vmul.f32 %v770_v51, %v405_v56 }
  0xf7   : > { %456 = vmatmul.f32.vlgmr.msra.gmra.mxu1 %v418_v60  ;;  %v407_v63 = vadd.f32 %v770_v51, %v406_v61 }
  0xf9   : > { %v411_v1 = vsel %vm410_vm6, %v770_v51, %v407_v63 }
  0xfa   : > { %v416_v3 = vsel %vm413_vm7, %v415_v0, %v411_v1 }
  0xfb   : > { %v419_v4 = vmul.f32 %v774_v2, %v416_v3 }
  0xfd   : > { %459 = vmatmul.f32.vlgmr.msra.gmra.mxu3 %v419_v4 }
 0x174   : > { %v457_v6 = vpop.f32.mrf.mxu1 }
 0x175   : > { %v458_v7 = vadd.f32 %v762_v5, %v457_v6 }
 0x177   : > { %v463_v8 = vadd.f32 %v458_v7, %v1168_v16 }
 0x179   : > { %v465_v9 = vmul.f32 0.2, %v463_v8 }
 0x17b   : > { %v467_v10 = vmax.f32 %v463_v8, %v465_v9 }
 0x17d   : > { %469 = vst [vmem:[%s330_s30] sm:$0xff] %v467_v10 }
 0x180   : > { %v460_v11 = vpop.f32.mrf.mxu3 }
 0x181   : > { %v461_v12 = vadd.f32 %v762_v5, %v460_v11 }
 0x183   : > { %v464_v13 = vadd.f32 %v461_v12, %v1171_v17 }
 0x185   : > { %v466_v14 = vmul.f32 0.2, %v464_v13 }
 0x187   : > { %v468_v15 = vmax.f32 %v464_v13, %v466_v14 }
 0x189   : > { %470 = vst [vmem:[%s330_s30 + $0x8] sm:$0xff] %v468_v15 }
 0x18a   : > { %922 = shalt.err (!%p919_p0)
}
 0x18b   : > { %s995_s25 = smov 128   ;;  %s996_s2 = smov 8  }
 0x18c   : > { %681 = dma.vmem_to_hbm [thread:$0]  (%p1112_p7), %s487_s29, 256, %s489_s17, %s472_s10, %s995_s25, %s995_s25, %s996_s2  }
 0x18d PF: > { %s503_s13 = sand.u32 1, %s969_s18   ;;  %p698_p3 = pnand %p619_p11, %p1072_p6 }
 0x18e   : > { %s504_s24 = scalar_lea.sflag [#allocation4], %s503_s13 }
 0x18f   : > { %p699_p5 = pneg %p698_p3 }
 0x191   : > { %964 = dma.done.wait (%p699_p5), %s504_s24, 256  }
 0x192   : > { %966 = vsyncadd (%p699_p5), %s504_s24, 4294967040  ;;  %s25_s23 = sadd.s32 1, %s989_s23   ;;  %s1247_s26 = sld [smem:[#allocation18_spill]] }
 0x193   : > { %p22_p9 = scmp.ge.s32.totalorder %s25_s23, 4   ;;  %s1248_s28 = sld [smem:[#allocation17_spill]] }
 0x194   : > { %s1249_s18 = smov %s973_s19  ;;  %s1250_s19 = smov %s977_s20 }
 0x195   : > { %s1252_s21 = smov %s985_s22  ;;  %24 = sbr.rel (!%p22_p9) target bundleno = 12 (0xc), region = 106 }
 0x198   : > { %s1251_s20 = smov %s1247_s26 }
 0x199   : > { %s1253_s22 = smov %s1248_s28 }
 0x19a   :  { %510 = vsyncpa [#allocation3], 1 }
 0x19b   :  { %512 = vsyncpa [#allocation3 + $0x1], 1 }
 0x19c   :  { %513 = vsyncpa [#allocation6], 1 }
 0x19d   :  { %515 = vsyncpa [#allocation6 + $0x1], 1 }
 0x19e   :  { %516 = vsyncpa [#allocation9], 1 }
 0x19f   :  { %517 = vsyncpa [#allocation4], 1 }
 0x1a0   :  { %519 = vsyncpa [#allocation4 + $0x1], 1 }

</bundles_post_ra>
